<compile_context>
chip_gen: v7x
topology: tpu7x:2x2x1
jax: 0.10.0
libtpu: 0.0.40
codegen_flags: <defaults>
</compile_context>

<pallas_src>
import functools
import math

import jax
import jax.numpy as jnp
import numpy as np
from jax.experimental import pallas as pl
from jax.experimental.pallas import tpu as pltpu

_EPS = 1e-12  # torch.nn.functional.normalize default eps


def _round_up(x: int, m: int) -> int:
    return ((x + m - 1) // m) * m


def _matmul_kernel(x_ref, w_ref, o_ref, *, precision):
    # Single fused MXU matmul; all normalization/sigma already folded into the
    # operands in the wrapper.
    o_ref[...] = jnp.dot(
        x_ref[...], w_ref[...],
        preferred_element_type=jnp.float32,
        precision=precision,
    ).astype(o_ref.dtype)


def _choose_config(B, O, K, x_itemsize, tm_max, tn_max):
    """Pick grid layout + tile sizes under a conservative VMEM budget."""
    BUDGET = 28 * 1024 * 1024  # headroom under v7x 64 MiB physical / scoped limits
    b8 = max(_round_up(B, 8), 8)
    o128 = max(_round_up(O, 128), 128)

    tm = min(tm_max, b8)
    if b8 // tm < 2 and b8 >= 16:
        # Split the batch axis into >=2 blocks so both v7x TensorCores get work.
        tm = _round_up((b8 + 1) // 2, 8)

    # --- preferred: weights resident in VMEM, 1-D grid over batch tiles ---
    def est_resident(tm_):
        # double-buffered x / out blocks + (2x budgeted) resident weights
        return (2 * tm_ * K * x_itemsize
                + 2 * K * o128 * x_itemsize
                + 2 * tm_ * o128 * 4)

    tm_r = tm
    while est_resident(tm_r) > BUDGET and tm_r > 8:
        tm_r = max(8, _round_up(tm_r // 2, 8))
    if est_resident(tm_r) <= BUDGET:
        return dict(kind="resident", tm=tm_r, tn=o128, o_pad=o128)

    # --- fallback: 2-D grid over (batch, output) tiles ---
    tn = min(tn_max, o128)
    tn = max(128, (tn // 128) * 128)

    def est_2d(tm_, tn_):
        return (2 * tm_ * K * x_itemsize
                + 2 * K * tn_ * x_itemsize
                + 2 * tm_ * tn_ * 4)

    while est_2d(tm, tn) > BUDGET:
        if tn > 128:
            tn = max(128, ((tn // 2) // 128) * 128)
        elif tm > 8:
            tm = max(8, _round_up(tm // 2, 8))
        else:
            break
    # TODO(synk): if K grows so large that full-K blocks still exceed VMEM, a
    # 3-D grid tiling K with an f32 accumulator ("arbitrary" K axis) is needed.
    o_pad = _round_up(O, tn)
    return dict(kind="tiled", tm=tm, tn=tn, o_pad=o_pad)


def cosine_linear_bi_feat(xx, weight1, weight2, sigma, *,
                          matmul_dtype=jnp.float32, tm_max=512, tn_max=512):
    """Forward of CosineLinear_bi_feat (default args: training path).

    xx:      [B, f1 + f2]
    weight1: [O, f1]      weight2: [O, f2]      sigma: scalar / [1]
    returns  [B, O] float32
    """
    B = xx.shape[0]
    O, f1 = weight1.shape
    f2 = weight2.shape[1]
    K = f1 + f2
    assert xx.shape[1] == K

    f32 = jnp.float32
    mm_dtype = jnp.dtype(matmul_dtype)
    sig = jnp.asarray(sigma, f32).reshape(())

    # ---- fold all normalization into the operands (one fused matmul) -------
    # Row norms of each half folded into x (eps matching F.normalize).
    x1 = xx[:, :f1].astype(f32)
    x2 = xx[:, f1:].astype(f32)
    inv1 = jax.lax.rsqrt(
        jnp.maximum(jnp.sum(x1 * x1, axis=1, keepdims=True), _EPS * _EPS))
    inv2 = jax.lax.rsqrt(
        jnp.maximum(jnp.sum(x2 * x2, axis=1, keepdims=True), _EPS * _EPS))
    xn = jnp.concatenate([x1 * inv1, x2 * inv2], axis=1)          # [B, K]

    # Column norms + sigma folded into the (pre-transposed, concatenated) weights.
    # TODO(synk): if weight1/weight2/sigma are static across calls, hoist this
    # one-time O(K*O) transform out of the per-call jit.
    w1 = weight1.astype(f32)
    w2 = weight2.astype(f32)
    invw1 = jax.lax.rsqrt(
        jnp.maximum(jnp.sum(w1 * w1, axis=1, keepdims=True), _EPS * _EPS))
    invw2 = jax.lax.rsqrt(
        jnp.maximum(jnp.sum(w2 * w2, axis=1, keepdims=True), _EPS * _EPS))
    wcat = jnp.concatenate([w1 * (sig * invw1), w2 * (sig * invw2)], axis=1).T  # [K, O]

    # ---- tiling / layout ----------------------------------------------------
    cfg = _choose_config(B, O, K, mm_dtype.itemsize, tm_max, tn_max)
    tm, tn, O_pad = cfg["tm"], cfg["tn"], cfg["o_pad"]
    B_pad = _round_up(B, tm)

    xn = jnp.pad(xn, ((0, B_pad - B), (0, 0))).astype(mm_dtype)
    wcat = jnp.pad(wcat, ((0, 0), (0, O_pad - O))).astype(mm_dtype)

    if cfg["kind"] == "resident":
        # Weights DMA'd once (constant block index) and kept resident in VMEM.
        grid = (B_pad // tm,)
        in_specs = [
            pl.BlockSpec((tm, K), lambda i: (i, 0)),        # x batch tile
            pl.BlockSpec((K, O_pad), lambda i: (0, 0)),     # resident weights
        ]
        out_specs = pl.BlockSpec((tm, O_pad), lambda i: (i, 0))
        dim_sem = ("parallel",)
    else:
        n_i, n_j = B_pad // tm, O_pad // tn
        # Re-stream the smaller operand; the larger one is fetched once per
        # outer step (consecutive identical block index -> no re-DMA).
        if K * O_pad <= B_pad * K:          # weights smaller -> batch outer
            grid = (n_i, n_j)
            x_map = lambda i, j: (i, 0)
            w_map = lambda i, j: (0, j)
            o_map = lambda i, j: (i, j)
        else:                               # x smaller -> output outer
            grid = (n_j, n_i)
            x_map = lambda j, i: (i, 0)
            w_map = lambda j, i: (0, j)
            o_map = lambda j, i: (i, j)
        # (v5e: pipeline_mode=pl.Buffered(3) on the streamed operand can help
        #  if the DMA is exposed; default double-buffering kept here.)
        in_specs = [
            pl.BlockSpec((tm, K), x_map),
            pl.BlockSpec((K, tn), w_map),
        ]
        out_specs = pl.BlockSpec((tm, tn), o_map)
        dim_sem = ("parallel", "parallel")

    precision = (jax.lax.Precision.HIGHEST
                 if mm_dtype == jnp.dtype(jnp.float32)
                 else jax.lax.Precision.DEFAULT)
    kernel = functools.partial(_matmul_kernel, precision=precision)

    out = pl.pallas_call(
        kernel,
        out_shape=jax.ShapeDtypeStruct((B_pad, O_pad), jnp.float32),
        grid=grid,
        in_specs=in_specs,
        out_specs=out_specs,
        compiler_params=pltpu.CompilerParams(
            dimension_semantics=dim_sem,
            vmem_limit_bytes=48 * 1024 * 1024,   # explicit; < v7x 64 MiB physical
        ),
    )(xn, wcat)

    return out[:B, :O]


def _reference_np(xx, w1, w2, sigma, f1):
    """float64 numpy reference matching the PyTorch forward (default path)."""
    xx = np.asarray(xx, np.float64)
    w1 = np.asarray(w1, np.float64)
    w2 = np.asarray(w2, np.float64)

    def l2n(v):
        n = np.sqrt((v * v).sum(axis=1, keepdims=True))
        return v / np.maximum(n, _EPS)

    out = l2n(xx[:, :f1]) @ l2n(w1).T + l2n(xx[:, f1:]) @ l2n(w2).T
    return float(np.asarray(sigma).reshape(())) * out


if __name__ == "__main__":
    fwd = jax.jit(cosine_linear_bi_feat)
    fwd_bf16 = jax.jit(functools.partial(cosine_linear_bi_feat,
                                         matmul_dtype=jnp.bfloat16))

    # ---- check 1: module-default small shapes (B=2, f1=f2=32, out=16) ----
    in1, in2, out_f, batch = 32, 32, 16, 2
    key = jax.random.PRNGKey(0)
    kx, k1, k2 = jax.random.split(key, 3)
    stdv1 = 1.0 / math.sqrt(in1)
    stdv2 = 1.0 / math.sqrt(in2)
    w1 = jax.random.uniform(k1, (out_f, in1), jnp.float32, -stdv1, stdv1)
    w2 = jax.random.uniform(k2, (out_f, in2), jnp.float32, -stdv2, stdv2)
    sigma = jnp.ones((1,), jnp.float32)          # reset_parameters(): sigma = 1
    xx = jax.random.normal(kx, (batch, in1 + in2), jnp.float32)

    got = jax.block_until_ready(fwd(xx, w1, w2, sigma))
    want = _reference_np(xx, w1, w2, sigma, in1)
    np.testing.assert_allclose(np.asarray(got), want, rtol=1e-5, atol=1e-5)

    # ---- check 2: multi-tile grid + padding + sigma != 1 (f32 path) ----
    b2, f1b, f2b, ob = 300, 96, 160, 200
    kx2, k1b, k2b = jax.random.split(jax.random.PRNGKey(1), 3)
    w1b = jax.random.uniform(k1b, (ob, f1b), jnp.float32,
                             -1.0 / math.sqrt(f1b), 1.0 / math.sqrt(f1b))
    w2b = jax.random.uniform(k2b, (ob, f2b), jnp.float32,
                             -1.0 / math.sqrt(f2b), 1.0 / math.sqrt(f2b))
    xb = jax.random.normal(kx2, (b2, f1b + f2b), jnp.float32)
    sb = jnp.full((1,), 2.5, jnp.float32)
    got2 = jax.block_until_ready(fwd(xb, w1b, w2b, sb))
    want2 = _reference_np(xb, w1b, w2b, sb, f1b)
    np.testing.assert_allclose(np.asarray(got2), want2, rtol=1e-5, atol=1e-5)

    # ---- check 3: bf16 MXU-operand path (v5e/v6e/v7x throughput option) ----
    got3 = jax.block_until_ready(fwd_bf16(xb, w1b, w2b, sb))
    np.testing.assert_allclose(np.asarray(got3), want2, rtol=2e-2, atol=2e-2)

    print("KERNEL_OK")
</pallas_src>

<mosaic_0001>
module attributes {stable_mosaic.version = 11 : i64} {
  func.func @_matmul_kernel(%arg0: i32, %arg1: memref<8x64xf32, #tpu.memory_space<vmem>>, %arg2: memref<64x128xf32, #tpu.memory_space<vmem>>, %arg3: memref<8x128xf32, #tpu.memory_space<vmem>>) attributes {dimension_semantics = [#tpu.dimension_semantics<parallel>], iteration_bounds = array<i64: 1>, scalar_prefetch = 0 : i64, scratch_operands = 0 : i64, tpu.core_type = #tpu.core_type<tc>, window_params = [{transform_indices = @transform_0, window_bounds = array<i64: 8, 64>}, {pipeline_mode = #tpu.pipeline_mode<synchronous>, transform_indices = @transform_1, window_bounds = array<i64: 64, 128>}, {transform_indices = @transform_2, window_bounds = array<i64: 8, 128>}]} {
    %c0 = arith.constant 0 : index
    %c0_0 = arith.constant 0 : index
    %0 = vector.load %arg1[%c0, %c0_0] : memref<8x64xf32, #tpu.memory_space<vmem>>, vector<8x64xf32>
    %c0_1 = arith.constant 0 : index
    %c0_2 = arith.constant 0 : index
    %1 = vector.load %arg2[%c0_1, %c0_2] : memref<64x128xf32, #tpu.memory_space<vmem>>, vector<64x128xf32>
    %cst = arith.constant dense<0.000000e+00> : vector<8x128xf32>
    %2 = tpu.matmul %0, %1, %cst {dimension_numbers = #tpu.dot_dimension_numbers<[1], [0], [0], [1], [0, 0, 1, 1], [], []>, precision = #tpu.contract_precision<fp32>} : vector<8x64xf32>, vector<64x128xf32>, vector<8x128xf32> -> vector<8x128xf32>
    %c0_3 = arith.constant 0 : index
    %c0_4 = arith.constant 0 : index
    %3 = vector.load %arg3[%c0_3, %c0_4] : memref<8x128xf32, #tpu.memory_space<vmem>>, vector<8x128xf32>
    tpu.vector_store %arg3[%c0_3, %c0_4], %2 {strides = array<i32>} : memref<8x128xf32, #tpu.memory_space<vmem>>, vector<8x128xf32>,
    return
  }
  func.func @transform_0(%arg0: i32) -> (i32, i32) {
    %c0_i32 = arith.constant 0 : i32
    %c0_i32_0 = arith.constant 0 : i32
    return %arg0, %c0_i32 : i32, i32
  }
  func.func @transform_1(%arg0: i32) -> (i32, i32) {
    %c0_i32 = arith.constant 0 : i32
    %c0_i32_0 = arith.constant 0 : i32
    %c0_i32_1 = arith.constant 0 : i32
    return %c0_i32, %c0_i32_0 : i32, i32
  }
  func.func @transform_2(%arg0: i32) -> (i32, i32) {
    %c0_i32 = arith.constant 0 : i32
    %c0_i32_0 = arith.constant 0 : i32
    return %arg0, %c0_i32 : i32, i32
  }
}

</mosaic_0001>

<bundles_post_ra>
// kernel: cosine_linear_bi_feat.1
= control target key start
LH: loop header
LB: loop body
LE: loop exit
PB: predicated region body
PF: predicated region fallthrough
CT: control target
= control target key end

     0   :  { %v818_v0 = vmov 0.0|0.0   ;;  %vm819_vm0 = vmmov 0   ;;  %v820_v10 = vmov 0.0   ;;  %vm20_vm1 = vcmask 523264   ;;  %s973_s1 = inlined_call_operand.vmem [shape: f32[64,128], index: 1, kind: input, shape index: {}]   ;;  %s974_s0 = inlined_call_operand.vmem [shape: f32[8,64], index: 0, kind: input, shape index: {}]   ;;  %s975_s2 = inlined_call_operand.vmem [shape: f32[8,128], index: 2, kind: output, shape index: {}]  }
   0x1   :  { %734 = vmatprep.subr.bf16.mxu1 %v818_v0  ;;  %770 = vmatprep.subr.bf16.mxu0 %v818_v0  ;;  %v12_v1 = vld [vmem:[%s973_s1] sm:$0xff]  ;;  %v13_v2 = vld [vmem:[%s973_s1 + $0x8] sm:$0xff]  ;;  %v14_v3 = vld [vmem:[%s973_s1 + $0x10] sm:$0xff] }
   0x2   :  { %v25_v4 = vand.u32 4294901760, %v12_v1  ;;  %v28_v5 = vand.u32 4294901760, %v13_v2  ;;  %v15_v6 = vld [vmem:[%s973_s1 + $0x18] sm:$0xff]  ;;  %v31_v7 = vand.u32 4294901760, %v14_v3  ;;  %v16_v8 = vld [vmem:[%s973_s1 + $0x20] sm:$0xff]  ;;  %v17_v9 = vld [vmem:[%s973_s1 + $0x28] sm:$0xff]  ;;  %636 = vmatprep.mubr.msk.f32.mxu1 %vm819_vm0, %v820_v10  ;;  %693 = vmatprep.mubr.msk.f32.mxu0 %vm819_vm0, %v820_v10 }
   0x3   :  { %v34_v11 = vand.u32 4294901760, %v15_v6  ;;  %v37_v12 = vand.u32 4294901760, %v16_v8  ;;  %v11_v13 = vld [vmem:[%s974_s0] sm:$0xff]  ;;  %v40_v17 = vand.u32 4294901760, %v17_v9  ;;  %v18_v20 = vld [vmem:[%s973_s1 + $0x30] sm:$0xff]  ;;  %v19_v21 = vld [vmem:[%s973_s1 + $0x38] sm:$0xff] }
   0x4   :  { %v863_v14 = vpack.c.bf16 %v28_v5, %v25_v4  ;;  %v865_v15 = vsub.f32 %v12_v1, %v25_v4  ;;  %v867_v16 = vsub.f32 %v13_v2, %v28_v5  ;;  %v869_v18 = vsub.f32 %v14_v3, %v31_v7 }
   0x5   :  { %v871_v19 = vsub.f32 %v15_v6, %v34_v11  ;;  %v881_v22 = vpack.c.bf16 %v34_v11, %v31_v7  ;;  %v22_v23 = vsel %vm20_vm1, %v11_v13, 0  ;;  %v889_v27 = vpack.c.bf16 %v40_v17, %v37_v12 }
   0x6   :  { %736 = vmatpush3.bf16.msra.mxu1 %v863_v14  ;;  %772 = vmatpush3.bf16.msra.mxu0 %v863_v14  ;;  %v885_v24 = vand.u32 4294901760, %v22_v23  ;;  %v110_v25 = vand.u32 4294901760, %v865_v15  ;;  %v117_v26 = vand.u32 4294901760, %v867_v16  ;;  %v43_v28 = vand.u32 4294901760, %v18_v20 }
   0x7   :  { %737 = vmatprep.subr.bf16.mxu1 %v818_v0  ;;  %773 = vmatprep.subr.bf16.mxu0 %v818_v0  ;;  %v46_v29 = vand.u32 4294901760, %v19_v21  ;;  %v891_v30 = vsub.f32 %v16_v8, %v37_v12  ;;  %v124_v32 = vand.u32 4294901760, %v869_v18  ;;  %v131_v33 = vand.u32 4294901760, %v871_v19 }
   0x8   :  { %v894_v31 = vsub.f32 %v22_v23, %v885_v24  ;;  %v900_v34 = vsub.f32 %v17_v9, %v40_v17  ;;  %v111_v35 = vsub.f32 %v865_v15, %v110_v25  ;;  %v118_v36 = vsub.f32 %v867_v16, %v117_v26 }
   0x9   :  { %v907_v38 = vpack.c.bf16 %v46_v29, %v43_v28  ;;  %v909_v39 = vsub.f32 %v18_v20, %v43_v28  ;;  %v125_v41 = vsub.f32 %v869_v18, %v124_v32  ;;  %v132_v42 = vsub.f32 %v871_v19, %v131_v33 }
   0xa   :  { %739 = vmatpush3.bf16.msra.mxu1 %v881_v22  ;;  %775 = vmatpush3.bf16.msra.mxu0 %v881_v22  ;;  %v99_v37 = vand.u32 4294901760, %v894_v31  ;;  %v138_v43 = vand.u32 4294901760, %v891_v30  ;;  %v917_v44 = vsub.f32 %v19_v21, %v46_v29  ;;  %v112_v45 = vand.u32 4294901760, %v111_v35 }
   0xb   :  { %740 = vmatprep.subr.bf16.mxu1 %v818_v0  ;;  %776 = vmatprep.subr.bf16.mxu0 %v818_v0  ;;  %v119_v46 = vand.u32 4294901760, %v118_v36  ;;  %v145_v47 = vand.u32 4294901760, %v900_v34  ;;  %v783_v48 = vpack.c.bf16 %v117_v26, %v110_v25  ;;  %v126_v50 = vand.u32 4294901760, %v125_v41 }
   0xc   :  { %v100_v40 = vsub.f32 %v894_v31, %v99_v37  ;;  %v133_v51 = vand.u32 4294901760, %v132_v42  ;;  %v139_v52 = vsub.f32 %v891_v30, %v138_v43  ;;  %v152_v55 = vand.u32 4294901760, %v909_v39 }
   0xd   :  { %v747_v53 = vpack.c.bf16 %v119_v46, %v112_v45  ;;  %v146_v54 = vsub.f32 %v900_v34, %v145_v47  ;;  %v159_v56 = vand.u32 4294901760, %v917_v44  ;;  %v786_v58 = vpack.c.bf16 %v131_v33, %v124_v32 }
   0xe   :  { %742 = vmatpush3.bf16.msra.mxu1 %v889_v27  ;;  %778 = vmatpush3.bf16.msra.mxu0 %v889_v27  ;;  %v101_v49 = vand.u32 4294901760, %v100_v40  ;;  %v750_v57 = vpack.c.bf16 %v133_v51, %v126_v50  ;;  %v140_v59 = vand.u32 4294901760, %v139_v52  ;;  %v153_v61 = vsub.f32 %v909_v39, %v152_v55 }
   0xf   :  { %743 = vmatprep.subr.bf16.mxu1 %v818_v0  ;;  %779 = vmatprep.subr.bf16.mxu0 %v818_v0  ;;  %v147_v60 = vand.u32 4294901760, %v146_v54  ;;  %v160_v62 = vsub.f32 %v917_v44, %v159_v56  ;;  %v789_v1 = vpack.c.bf16 %v145_v47, %v138_v43  ;;  %v792_v5 = vpack.c.bf16 %v159_v56, %v152_v55 }
  0x10   :  { %v154_v2 = vand.u32 4294901760, %v153_v61  ;;  %v759_v6 = vpack.c.bf16 %v867_v16, %v865_v15  ;;  %v762_v7 = vpack.c.bf16 %v871_v19, %v869_v18  ;;  %v765_v8 = vpack.c.bf16 %v900_v34, %v891_v30 }
  0x11   :  { %v753_v63 = vpack.c.bf16 %v147_v60, %v140_v59  ;;  %v161_v3 = vand.u32 4294901760, %v160_v62  ;;  %v768_v9 = vpack.c.bf16 %v917_v44, %v909_v39 }
  0x12   :  { %745 = vmatpush3.bf16.msra.mxu1 %v907_v38  ;;  %781 = vmatpush3.bf16.msra.mxu0 %v907_v38 }
  0x13   :  { %746 = vmatprep.subr.bf16.mxu1 %v818_v0  ;;  %782 = vmatprep.subr.bf16.mxu0 %v818_v0  ;;  %v756_v4 = vpack.c.bf16 %v161_v3, %v154_v2 }
  0x15   :  { %637 = vmatmul.mubr.f32.vlgmr.msra.gmra.mrb[0].mxu1 %v101_v49  ;;  %694 = vmatmul.mubr.f32.vlgmr.msra.gmra.mrb[0].mxu0 %v99_v37 }
  0x16   :  { %748 = vmatpush3.bf16.msra.mxu1 %v747_v53  ;;  %784 = vmatpush3.bf16.msra.mxu0 %v783_v48 }
  0x17   :  { %749 = vmatprep.subr.bf16.mxu1 %v818_v0  ;;  %785 = vmatprep.subr.bf16.mxu0 %v818_v0 }
  0x18   :  { %655 = vmatprep.mubr.msk.f32.mxu1 %vm819_vm0, %v820_v10  ;;  %712 = vmatprep.mubr.msk.f32.mxu0 %vm819_vm0, %v820_v10 }
  0x1a   :  { %751 = vmatpush3.bf16.msra.mxu1 %v750_v57  ;;  %787 = vmatpush3.bf16.msra.mxu0 %v786_v58 }
  0x1b   :  { %752 = vmatprep.subr.bf16.mxu1 %v818_v0  ;;  %788 = vmatprep.subr.bf16.mxu0 %v818_v0 }
  0x1e   :  { %754 = vmatpush3.bf16.msra.mxu1 %v753_v63  ;;  %790 = vmatpush3.bf16.msra.mxu0 %v789_v1 }
  0x1f   :  { %755 = vmatprep.subr.bf16.mxu1 %v818_v0  ;;  %791 = vmatprep.subr.bf16.mxu0 %v818_v0 }
  0x22   :  { %757 = vmatpush3.bf16.msra.mxu1 %v756_v4  ;;  %793 = vmatpush3.bf16.msra.mxu0 %v792_v5 }
  0x23   :  { %758 = vmatprep.subr.bf16.mxu1 %v818_v0  ;;  %794 = vmatprep.subr.bf16.mxu0 %v818_v0 }
  0x25   :  { %656 = vmatmul.mubr.f32.vlgmr.msra.gmra.mrb[0].mxu1 %v885_v24  ;;  %713 = vmatmul.mubr.f32.vlgmr.msra.gmra.mrb[0].mxu0 %v885_v24 }
  0x26   :  { %760 = vmatpush3.bf16.msra.mxu1 %v759_v6  ;;  %796 = vmatpush3.bf16.msra.mxu0 %v863_v14 }
  0x27   :  { %761 = vmatprep.subr.bf16.mxu1 %v818_v0  ;;  %797 = vmatprep.subr.bf16.mxu0 %v818_v0 }
  0x28   :  { %674 = vmatprep.mubr.msk.f32.mxu1 %vm819_vm0, %v820_v10  ;;  %731 = vmatprep.mubr.msk.f32.mxu0 %vm819_vm0, %v820_v10 }
  0x2a   :  { %763 = vmatpush3.bf16.msra.mxu1 %v762_v7  ;;  %799 = vmatpush3.bf16.msra.mxu0 %v881_v22 }
  0x2b   :  { %764 = vmatprep.subr.bf16.mxu1 %v818_v0  ;;  %800 = vmatprep.subr.bf16.mxu0 %v818_v0 }
  0x2e   :  { %766 = vmatpush3.bf16.msra.mxu1 %v765_v8  ;;  %802 = vmatpush3.bf16.msra.mxu0 %v889_v27 }
  0x2f   :  { %767 = vmatprep.subr.bf16.mxu1 %v818_v0  ;;  %803 = vmatprep.subr.bf16.mxu0 %v818_v0 }
  0x32   :  { %769 = vmatpush3.bf16.msra.mxu1 %v768_v9  ;;  %805 = vmatpush3.bf16.msra.mxu0 %v907_v38 }
  0x35   :  { %675 = vmatmul.mubr.f32.vlgmr.msra.gmra.mrb[0].mxu1 %v894_v31  ;;  %732 = vmatmul.mubr.f32.vlgmr.msra.gmra.mrb[0].mxu0 %v885_v24 }
 0x108   :  { %v302_v10 = vpop.f32.mrb[0].mxu1  ;;  %v557_v11 = vpop.f32.mrb[0].mxu0 }
 0x109   :  { %v806_v12 = vadd.f32 %v557_v11, %v302_v10  ;;  %v676_v13 = vpop.f32.mrb[1].mxu1  ;;  %v733_v14 = vpop.f32.mrb[1].mxu0 }
 0x10b   :  { %561 = vst [vmem:[%s975_s2] sm:$0xff] %v806_v12 }

</bundles_post_ra>
